<compile_context>
chip_gen: v7x
topology: tpu7x:2x2x1
jax: 0.10.0
libtpu: 0.0.40
codegen_flags: <defaults>
</compile_context>

<pallas_src>
import jax
import jax.numpy as jnp
from jax import lax
from jax.experimental import pallas as pl
from jax.experimental.pallas import tpu as pltpu


def _round_up(n: int, m: int) -> int:
    return ((n + m - 1) // m) * m


def _vmem_capacity_bytes() -> int:
    try:
        return int(pltpu.get_tpu_info().vmem_capacity_bytes)
    except Exception:
        return 64 * 2**20  # conservative (v7x-sized) fallback


# --------------------------------------------------------------------------- kernels
def _resident_kernel(x_ref, w1_ref, b1_ref, w2_ref, b2_ref, o_ref):
    # x_ref:  [TB, H] (matmul dtype)      w1_ref: [H, H] (in, out) matmul dtype
    # b1_ref: [1, H] f32                  w2_ref: [1, H] f32
    # b2_ref: [1] f32 (SMEM)              o_ref:  [TB, 1] f32
    h = lax.dot_general(
        x_ref[...], w1_ref[...],
        dimension_numbers=(((1,), (0,)), ((), ())),   # native [M,K] x [K,N]
        preferred_element_type=jnp.float32,
    )
    h = jnp.tanh(h + b1_ref[...])                     # f32 epilogue
    # Output head: VPU multiply + XLU lane reduce (avoids degenerate N=1 MXU matmul).
    y = jnp.sum(h * w2_ref[...], axis=-1, keepdims=True) + b2_ref[0]
    o_ref[...] = y.astype(o_ref.dtype)


def _ktiled_kernel(x_ref, w1_ref, b1_ref, w2_ref, b2_ref, o_ref, acc_ref):
    # Grid = (batch tiles, K tiles); reduction axis last.
    # x_ref: [TB, TK]   w1_ref: [TK, H] (in, out)   acc_ref: [TB, H] f32 scratch.
    k = pl.program_id(1)

    @pl.when(k == 0)
    def _():
        acc_ref[...] = jnp.zeros_like(acc_ref)

    acc_ref[...] += lax.dot_general(
        x_ref[...], w1_ref[...],
        dimension_numbers=(((1,), (0,)), ((), ())),
        preferred_element_type=jnp.float32,
    )

    @pl.when(k == pl.num_programs(1) - 1)
    def _():
        h = jnp.tanh(acc_ref[...] + b1_ref[...])
        y = jnp.sum(h * w2_ref[...], axis=-1, keepdims=True) + b2_ref[0]
        o_ref[...] = y.astype(o_ref.dtype)


# --------------------------------------------------------------------------- wrapper
def regression_head(x, w_dense, b_dense, w_out, b_out, *,
                    matmul_dtype=jnp.bfloat16, force_k_tiling=False, k_tile=None):
    """RegressionHead forward (double=False, eval-mode dropout).

    x: [B, H]; w_dense: [H, H] (out, in); b_dense: [H]; w_out: [1, H]; b_out: [1].
    Returns [B, 1] float32.  matmul_dtype=jnp.float32 gives the exact f32 reference
    numerics; the bf16 default feeds the MXU its native operand dtype.
    """
    x = jnp.asarray(x, jnp.float32)
    B, H = x.shape
    mm_dtype = jnp.dtype(matmul_dtype)
    mm_bytes = mm_dtype.itemsize

    x_mm = x.astype(mm_dtype)
    w1 = jnp.asarray(w_dense, jnp.float32).T.astype(mm_dtype)   # [H(in), H(out)] once
    b1 = jnp.asarray(b_dense, jnp.float32)[None, :]             # [1, H]
    w2 = jnp.asarray(w_out, jnp.float32)                        # [1, H]
    b2 = jnp.asarray(b_out, jnp.float32).reshape(1)             # [1] -> SMEM scalar

    # ---- per-generation sizing ------------------------------------------------
    vmem_cap = _vmem_capacity_bytes()
    budget = int(0.75 * vmem_cap)              # headroom for compiler-internal scratch
    small_vmem = vmem_cap <= 80 * 2**20        # v7x-class part: 64 MiB, 2 TensorCores
    max_tb = 512 if small_vmem else 1024       # bigger tiles on 128-MiB v5e/v6e
    min_steps = 2 if small_vmem else 1         # >=2 batch tiles so both v7x TCs work

    tb0 = max(8, min(max_tb, _round_up(pl.cdiv(B, min_steps), 8)))

    cost = pl.CostEstimate(
        flops=2 * B * H * H + 4 * B * H,
        transcendentals=B * H,
        bytes_accessed=B * H * mm_bytes + H * H * mm_bytes + 2 * H * 4 + B * 4,
    )

    # ---- resident-weight path (W_dense fully in VMEM) -------------------------
    def resident_bytes(t):
        return (2 * H * H * mm_bytes       # W_dense (conservatively counted x2 buffers)
                + 2 * t * H * mm_bytes     # double-buffered x tiles
                + 2 * t * H * 4            # f32 matmul result + tanh activation
                + 2 * t * 128 * 4          # (t, 1) out tile, lane-padded
                + 4 * 8 * H * 4)           # b_dense / w_out rows, sublane-padded

    tb = tb0
    while tb > 8 and resident_bytes(tb) > budget:
        tb = max(8, _round_up(tb // 2, 8))
    use_resident = (not force_k_tiling) and resident_bytes(tb) <= budget

    if use_resident:
        grid = (pl.cdiv(B, tb),)                    # ragged last block, no jnp.pad copy
        vmem_limit = int(min(budget, max(16 * 2**20, 2 * resident_bytes(tb))))
        return pl.pallas_call(
            _resident_kernel,
            out_shape=jax.ShapeDtypeStruct((B, 1), jnp.float32),
            grid=grid,
            in_specs=[
                pl.BlockSpec((tb, H), lambda i: (i, 0)),    # streamed x tiles
                pl.BlockSpec((H, H), lambda i: (0, 0)),     # resident W (in, out)
                pl.BlockSpec((1, H), lambda i: (0, 0)),     # b_dense row
                pl.BlockSpec((1, H), lambda i: (0, 0)),     # w_out row
                pl.BlockSpec(memory_space=pltpu.MemorySpace.SMEM),  # b_out scalar
            ],
            out_specs=pl.BlockSpec((tb, 1), lambda i: (i, 0)),
            compiler_params=pltpu.CompilerParams(
                dimension_semantics=("parallel",),
                vmem_limit_bytes=vmem_limit,
            ),
            cost_estimate=cost,
        )(x_mm, w1, b1, w2, b2)

    # ---- K-tiled fallback: stream W_dense over the reduction axis -------------
    if k_tile is not None:
        tk = int(k_tile)
        kp = _round_up(H, tk)
    elif H <= 512:
        tk, kp = H, H                               # single K block == full dim
    else:
        tk = next((c for c in (512, 256, 128) if H % c == 0), 128)
        kp = _round_up(H, tk)

    if kp != H:
        # Zero-pad only the contraction axis (exact: zero rows/cols add nothing).
        x_mm = jnp.pad(x_mm, ((0, 0), (0, kp - H)))
        w1 = jnp.pad(w1, ((0, kp - H), (0, 0)))

    def ktiled_bytes(t):
        return (2 * t * tk * mm_bytes      # double-buffered x tiles
                + 2 * tk * H * mm_bytes    # double-buffered W slabs
                + t * H * 4                # f32 accumulator scratch
                + t * H * 4                # tanh epilogue temp
                + 2 * t * 128 * 4          # out tile
                + 4 * 8 * H * 4)           # b_dense / w_out rows

    tb = tb0
    while tb > 8 and ktiled_bytes(tb) > budget:
        tb = max(8, _round_up(tb // 2, 8))

    grid = (pl.cdiv(B, tb), kp // tk)
    vmem_limit = int(min(budget, max(16 * 2**20, 2 * ktiled_bytes(tb))))
    return pl.pallas_call(
        _ktiled_kernel,
        out_shape=jax.ShapeDtypeStruct((B, 1), jnp.float32),
        grid=grid,
        in_specs=[
            pl.BlockSpec((tb, tk), lambda i, k: (i, k)),    # x tile (batch, K)
            pl.BlockSpec((tk, H), lambda i, k: (k, 0)),     # W slab over K
            pl.BlockSpec((1, H), lambda i, k: (0, 0)),      # b_dense row
            pl.BlockSpec((1, H), lambda i, k: (0, 0)),      # w_out row
            pl.BlockSpec(memory_space=pltpu.MemorySpace.SMEM),  # b_out scalar
        ],
        out_specs=pl.BlockSpec((tb, 1), lambda i, k: (i, 0)),
        scratch_shapes=[pltpu.VMEM((tb, H), jnp.float32)],
        compiler_params=pltpu.CompilerParams(
            dimension_semantics=("parallel", "arbitrary"),
            vmem_limit_bytes=vmem_limit,
        ),
        cost_estimate=cost,
    )(x_mm, w1, b1, w2, b2)


def _reference(x, w_dense, b_dense, w_out, b_out):
    h = jnp.tanh(x @ w_dense.T + b_dense)
    return h @ w_out.T + b_out


if __name__ == "__main__":
    root = jax.random.PRNGKey(0)
    (k_x, k_w1, k_b1, k_w2, k_b2,
     k_x2, k_w12, k_b12, k_w22, k_b22) = jax.random.split(root, 10)

    # --- config 1: B=8, H=32 (resident-weight path) ---------------------------
    B, H = 8, 32
    bound = 1.0 / (H ** 0.5)
    x = jax.random.normal(k_x, (B, H), dtype=jnp.float32)
    w_dense = jax.random.uniform(k_w1, (H, H), jnp.float32, -bound, bound)   # [out, in]
    b_dense = jax.random.uniform(k_b1, (H,), jnp.float32, -bound, bound)
    w_out = jax.random.uniform(k_w2, (1, H), jnp.float32, -bound, bound)     # [out, in]
    b_out = jax.random.uniform(k_b2, (1,), jnp.float32, -bound, bound)
    y_ref = _reference(x, w_dense, b_dense, w_out, b_out)

    # 1a) exact f32 MXU path (matches the PyTorch double=False reference tightly)
    y_f32 = jax.block_until_ready(
        regression_head(x, w_dense, b_dense, w_out, b_out, matmul_dtype=jnp.float32))
    assert y_f32.shape == (B, 1), y_f32.shape
    assert jnp.allclose(y_f32, y_ref, atol=1e-5, rtol=1e-5), \
        float(jnp.max(jnp.abs(y_f32 - y_ref)))

    # 1b) default bf16-MXU perf path (f32 accumulate) — looser tolerance
    y_bf16 = jax.block_until_ready(regression_head(x, w_dense, b_dense, w_out, b_out))
    assert y_bf16.shape == (B, 1), y_bf16.shape
    assert jnp.allclose(y_bf16, y_ref, atol=5e-2, rtol=5e-2), \
        float(jnp.max(jnp.abs(y_bf16 - y_ref)))

    # --- config 2: B=20, H=256 — force the K-tiled fallback + ragged batch -----
    B2, H2 = 20, 256
    bound2 = 1.0 / (H2 ** 0.5)
    x2 = jax.random.normal(k_x2, (B2, H2), dtype=jnp.float32)
    w_dense2 = jax.random.uniform(k_w12, (H2, H2), jnp.float32, -bound2, bound2)
    b_dense2 = jax.random.uniform(k_b12, (H2,), jnp.float32, -bound2, bound2)
    w_out2 = jax.random.uniform(k_w22, (1, H2), jnp.float32, -bound2, bound2)
    b_out2 = jax.random.uniform(k_b22, (1,), jnp.float32, -bound2, bound2)
    y2_ref = _reference(x2, w_dense2, b_dense2, w_out2, b_out2)

    y2 = jax.block_until_ready(
        regression_head(x2, w_dense2, b_dense2, w_out2, b_out2,
                        matmul_dtype=jnp.float32, force_k_tiling=True, k_tile=128))
    assert y2.shape == (B2, 1), y2.shape
    assert jnp.allclose(y2, y2_ref, atol=1e-4, rtol=1e-4), \
        float(jnp.max(jnp.abs(y2 - y2_ref)))

    print("KERNEL_OK")
</pallas_src>

<mosaic_0001>
module attributes {stable_mosaic.version = 11 : i64} {
  func.func @_resident_kernel(%arg0: i32, %arg1: memref<8x32xf32, #tpu.memory_space<vmem>>, %arg2: memref<32x32xf32, #tpu.memory_space<vmem>>, %arg3: memref<1x32xf32, #tpu.memory_space<vmem>>, %arg4: memref<1x32xf32, #tpu.memory_space<vmem>>, %arg5: memref<1xf32, #tpu.memory_space<smem>>, %arg6: memref<8x1xf32, #tpu.memory_space<vmem>>) attributes {dimension_semantics = [#tpu.dimension_semantics<parallel>], iteration_bounds = array<i64: 1>, scalar_prefetch = 0 : i64, scratch_operands = 0 : i64, tpu.core_type = #tpu.core_type<tc>, window_params = [{transform_indices = @transform_0, window_bounds = array<i64: 8, 32>}, {pipeline_mode = #tpu.pipeline_mode<synchronous>, transform_indices = @transform_1, window_bounds = array<i64: 32, 32>}, {pipeline_mode = #tpu.pipeline_mode<synchronous>, transform_indices = @transform_2, window_bounds = array<i64: 1, 32>}, {pipeline_mode = #tpu.pipeline_mode<synchronous>, transform_indices = @transform_3, window_bounds = array<i64: 1, 32>}, {transform_indices = @transform_4, window_bounds = array<i64: 1>}, {transform_indices = @transform_5, window_bounds = array<i64: 8, 1>}]} {
    %c0 = arith.constant 0 : index
    %c0_0 = arith.constant 0 : index
    %0 = vector.load %arg1[%c0, %c0_0] : memref<8x32xf32, #tpu.memory_space<vmem>>, vector<8x32xf32>
    %c0_1 = arith.constant 0 : index
    %c0_2 = arith.constant 0 : index
    %1 = vector.load %arg2[%c0_1, %c0_2] : memref<32x32xf32, #tpu.memory_space<vmem>>, vector<32x32xf32>
    %cst = arith.constant dense<0.000000e+00> : vector<8x32xf32>
    %2 = tpu.matmul %0, %1, %cst {dimension_numbers = #tpu.dot_dimension_numbers<[1], [0], [0], [1], [0, 0, 1, 1], [], []>} : vector<8x32xf32>, vector<32x32xf32>, vector<8x32xf32> -> vector<8x32xf32>
    %c0_3 = arith.constant 0 : index
    %c0_4 = arith.constant 0 : index
    %3 = vector.load %arg3[%c0_3, %c0_4] : memref<1x32xf32, #tpu.memory_space<vmem>>, vector<1x32xf32>
    %4 = vector.broadcast %3 : vector<1x32xf32> to vector<8x32xf32>
    %5 = arith.addf %2, %4 : vector<8x32xf32>
    %6 = math.tanh %5 : vector<8x32xf32>
    %c0_5 = arith.constant 0 : index
    %c0_6 = arith.constant 0 : index
    %7 = vector.load %arg4[%c0_5, %c0_6] : memref<1x32xf32, #tpu.memory_space<vmem>>, vector<1x32xf32>
    %8 = vector.broadcast %7 : vector<1x32xf32> to vector<8x32xf32>
    %9 = arith.mulf %6, %8 : vector<8x32xf32>
    %cst_7 = arith.constant dense<0.000000e+00> : vector<8xf32>
    %10 = vector.multi_reduction <add>, %9, %cst_7 [1] : vector<8x32xf32> to vector<8xf32>
    %11 = vector.shape_cast %10 : vector<8xf32> to vector<8x1xf32>
    %c0_8 = arith.constant 0 : index
    %12 = memref.load %arg5[%c0_8] : memref<1xf32, #tpu.memory_space<smem>>
    %13 = vector.broadcast %12 : f32 to vector<8x1xf32>
    %14 = arith.addf %11, %13 : vector<8x1xf32>
    %c0_9 = arith.constant 0 : index
    %c0_10 = arith.constant 0 : index
    %15 = vector.load %arg6[%c0_9, %c0_10] : memref<8x1xf32, #tpu.memory_space<vmem>>, vector<8x1xf32>
    tpu.vector_store %arg6[%c0_9, %c0_10], %14 {strides = array<i32>} : memref<8x1xf32, #tpu.memory_space<vmem>>, vector<8x1xf32>,
    return
  }
  func.func @transform_0(%arg0: i32) -> (i32, i32) {
    %c0_i32 = arith.constant 0 : i32
    %c0_i32_0 = arith.constant 0 : i32
    return %arg0, %c0_i32 : i32, i32
  }
  func.func @transform_1(%arg0: i32) -> (i32, i32) {
    %c0_i32 = arith.constant 0 : i32
    %c0_i32_0 = arith.constant 0 : i32
    %c0_i32_1 = arith.constant 0 : i32
    return %c0_i32, %c0_i32_0 : i32, i32
  }
  func.func @transform_2(%arg0: i32) -> (i32, i32) {
    %c0_i32 = arith.constant 0 : i32
    %c0_i32_0 = arith.constant 0 : i32
    %c0_i32_1 = arith.constant 0 : i32
    return %c0_i32, %c0_i32_0 : i32, i32
  }
  func.func @transform_3(%arg0: i32) -> (i32, i32) {
    %c0_i32 = arith.constant 0 : i32
    %c0_i32_0 = arith.constant 0 : i32
    %c0_i32_1 = arith.constant 0 : i32
    return %c0_i32, %c0_i32_0 : i32, i32
  }
  func.func @transform_4(%arg0: i32) -> i32 {
    %c0_i32 = arith.constant 0 : i32
    %c0_i32_0 = arith.constant 0 : i32
    return %c0_i32 : i32
  }
  func.func @transform_5(%arg0: i32) -> (i32, i32) {
    %c0_i32 = arith.constant 0 : i32
    %c0_i32_0 = arith.constant 0 : i32
    return %arg0, %c0_i32 : i32, i32
  }
}

</mosaic_0001>

<bundles_post_ra>
// kernel: tpu_custom_call.1
= control target key start
LH: loop header
LB: loop body
LE: loop exit
PB: predicated region body
PF: predicated region fallthrough
CT: control target
= control target key end

     0   :  { %11 = vsyncpa [#allocation4], 0  ;;  %s318_s0 = inlined_call_operand.hbm [shape: f32[8,32], index: 0, kind: input, shape index: {}]   ;;  %s319_s1 = inlined_call_operand.hbm [shape: f32[32,32], index: 1, kind: input, shape index: {}]   ;;  %s320_s2 = inlined_call_operand.vmem [shape: f32[1,32], index: 2, kind: input, shape index: {}]   ;;  %s321_s3 = inlined_call_operand.vmem [shape: f32[1,32], index: 3, kind: input, shape index: {}]   ;;  %s322_s4 = inlined_call_operand.<no memory space> [shape: f32[1], index: 4, kind: input, shape index: {}]   ;;  %s323_s5 = inlined_call_operand.vmem [shape: f32[8,1], index: 5, kind: output, shape index: {}]  }
   0x1   :  { %12 = vsyncpa [#allocation6], 0  ;;  %s238_s18 = smov [#allocation3]   ;;  %s239_s20 = smov [#allocation5]  }
   0x2   :  { %s19_s19 = sshll.u32 %s238_s18, 4  ;;  %s28_s21 = sshll.u32 %s239_s20, 4  ;;  %s20_s19 = int_to_ptr.vmem [resolvable:$true] %s19_s19  ;;  %s275_s21 = int_to_ptr.vmem [resolvable:$true] %s28_s21 }
   0x3   :  { %s190_s24 = scalar_lea.hbm %s318_s0, 128 }
   0x4   :  { %p191_p0 = scmp.ne.s32.totalorder %s318_s0, %s190_s24  ;;  %p194_p1 = scmp.lt.u32.totalorder %s190_s24, %s318_s0 }
   0x6   :  { %p196_p2 = pnand %p194_p1, %p191_p0 }
   0x8   :  { %199 = shalt.err (!%p196_p2)
}
   0x9   :  { %s200_s29 = scalar_lea.vmem %s20_s19, 128  ;;  %p205_p4 = scmp.lt.s32.totalorder %s20_s19, %s20_s19 }
   0xa   :  { %p201_p3 = scmp.ne.s32.totalorder %s20_s19, %s200_s29  ;;  %p206_p5 = scmp.lt.s32.totalorder %s200_s29, %s200_s29 }
   0xc   :  { %p207_p6 = por %p206_p5, %p205_p4 }
   0xe   :  { %p208_p7 = pnand %p207_p6, %p201_p3 }
  0x10   :  { %211 = shalt.err (!%p208_p7)
}
  0x11   :  { %22 = dma.hbm_to_vmem [thread:$0]  %s318_s0, 128, %s20_s19, [#allocation4]  }
  0x12   :  { %s212_s9 = scalar_lea.hbm %s319_s1, 512 }
  0x13   :  { %p213_p8 = scmp.ne.s32.totalorder %s319_s1, %s212_s9  ;;  %p216_p9 = scmp.lt.u32.totalorder %s212_s9, %s319_s1 }
  0x15   :  { %p218_p10 = pnand %p216_p9, %p213_p8 }
  0x17   :  { %221 = shalt.err (!%p218_p10)
}
  0x18   :  { %s222_s14 = scalar_lea.vmem %s275_s21, 512  ;;  %p227_p12 = scmp.lt.s32.totalorder %s275_s21, %s275_s21 }
  0x19   :  { %p223_p11 = scmp.ne.s32.totalorder %s275_s21, %s222_s14  ;;  %p228_p13 = scmp.lt.s32.totalorder %s222_s14, %s222_s14 }
  0x1b   :  { %p229_p0 = por %p228_p13, %p227_p12 }
  0x1d   :  { %p230_p1 = pnand %p229_p0, %p223_p11 }
  0x1f   :  { %233 = shalt.err (!%p230_p1)
}
  0x20   :  { %s240_s0 = smov 128   ;;  %s241_s15 = smov 8  }
  0x21   :  { %34 = dma.hbm_to_vmem [thread:$0]  %s319_s1, 512, %s275_s21, [#allocation6], %s240_s0, %s240_s0, %s241_s15  }
  0x22   :  { %234 = dma.done.wait [#allocation4], 128  }
  0x23   :  { %235 = vsyncadd [#allocation4], 4294967168 }
  0x24   :  { %236 = dma.done.wait [#allocation6], 512  }
  0x25   :  { %237 = vsyncadd [#allocation6], 4294966784  ;;  %v242_v0 = vmov 0.0|0.0   ;;  %vm243_vm0 = vmmov 0   ;;  %v244_v1 = vmov 0.0   ;;  %v48_v2 = vld [vmem:[#allocation5] sm:$0xff]  ;;  %v146_v17 = vstv %s322_s4 }
  0x26   :  { %175 = vmatprep.subr.bf16.mxu0 %v242_v0  ;;  %172 = vmatprep.mubr.msk.f32.mxu0 %vm243_vm0, %v244_v1  ;;  %v49_v3 = vld [vmem:[#allocation5 + $0x8] sm:$0xff]  ;;  %v50_v4 = vld [vmem:[#allocation5 + $0x10] sm:$0xff]  ;;  %v51_v6 = vld [vmem:[#allocation5 + $0x18] sm:$0xff]  ;;  %vm59_vm1 = vcmask 261120   ;;  %vm148_vm2 = vcmask 7168  }
  0x27   :  { %v176_v5 = vpack.c.bf16 %v49_v3, %v48_v2  ;;  %v179_v7 = vpack.c.bf16 %v51_v6, %v50_v4  ;;  %v47_v8 = vld [vmem:[#allocation3] sm:$0xff] }
  0x28   :  { %v156_v9 = vld [vmem:[%s320_s2] ss:$0 sm:$0xff] }
  0x29   :  { %177 = vmatpush3.bf16.msra.mxu0 %v176_v5  ;;  %v158_v13 = vld [vmem:[%s321_s3] ss:$0 sm:$0xff] }
  0x2a   :  { %178 = vmatprep.subr.bf16.mxu0 %v242_v0 }
  0x2d   :  { %180 = vmatpush3.bf16.msra.mxu0 %v179_v7 }
  0x30   :  { %173 = vmatmul.mubr.msk.f32.vlgmr.msra.gmra.mrb[0].mxu0 %vm59_vm1, %v47_v8 }
 0x103   :  { %v129_v10 = vpop.f32.mrb[0].mxu0 }
 0x104   :  { %v130_v11 = vadd.f32 %v156_v9, %v129_v10  ;;  %v174_v12 = vpop.f32.mrb[1].mxu0 }
 0x106   :  { %188 = vtanh.f32 %v130_v11 }
 0x110   :  { %v189_v14 = vpop.eup %188 }
 0x111   :  { %v141_v15 = vmul.f32 %v189_v14, %v158_v13 }
 0x113   :  { %v142_v16 = vsel %vm59_vm1, %v141_v15, 0.0 }
 0x114   :  { %143 = vadd.xlane.f32.xlu0 %v142_v16 }
 0x1a1   :  { %v144_v18 = vpop.xlane.xlu0 %143 }
 0x1a2   :  { %v147_v19 = vadd.f32 %v146_v17, %v144_v18 }
 0x1a4   :  { %149 = vst.msk [vmem:[%s323_s5] sm:$0xff] %vm148_vm2, %v147_v19 }
 0x1a5   :  { %154 = vsyncpa [#allocation4], 1 }
 0x1a6   :  { %155 = vsyncpa [#allocation6], 1 }

</bundles_post_ra>
